<compile_context>
chip_gen: v5e
topology: v5e:2x2
jax: 0.10.0
libtpu: 0.0.40
codegen_flags: <defaults>
</compile_context>

<pallas_src>
import functools
import math

import jax
import jax.numpy as jnp
from jax import lax
from jax.experimental import pallas as pl
from jax.experimental.pallas import tpu as pltpu


def _round_up(a: int, b: int) -> int:
    return ((a + b - 1) // b) * b


def _cdiv(a: int, b: int) -> int:
    return -(-a // b)


def _div_term(d_model: int) -> jnp.ndarray:
    return jnp.exp(
        jnp.arange(0, d_model, 2, dtype=jnp.float32)
        * (-(math.log(10000.0) / d_model))
    )


def _build_fixed_weight(c_in: int, d_model: int) -> jnp.ndarray:
    """Reference sinusoidal table (matches the PyTorch __init__); used for checking."""
    position = jnp.arange(0, c_in, dtype=jnp.float32)[:, None]
    args = position * _div_term(d_model)
    w = jnp.zeros((c_in, d_model), dtype=jnp.float32)
    w = w.at[:, 0::2].set(jnp.sin(args))
    w = w.at[:, 1::2].set(jnp.cos(args))
    return w


def _fixed_embedding_kernel(idx_ref, fp_ref, o_ref, *, d_model: int, pack: int):
    # idx_ref : (TR, pack) int32 -- `pack` token indices per slab row
    # fp_ref  : (2, W)     f32   -- row 0: per-column frequency, row 1: per-column phase
    # o_ref   : (TR, W)    f32   -- lane-dense output slab (W = pack * d_model)
    tr, w = o_ref.shape

    idx_f = idx_ref[...].astype(jnp.float32)          # (TR, pack)
    fp = fp_ref[...]                                  # (2, W)
    freq = fp[0:1, :]                                 # (1, W)
    phase = fp[1:2, :]                                # (1, W)

    # Expand each token's index to all of that token's output columns.
    if pack == 1:
        pos = jnp.broadcast_to(idx_f, (tr, w))
    elif pack <= 4:
        # Short select chain (columns are ordered by token-within-row).
        col = lax.broadcasted_iota(jnp.int32, (1, w), 1)
        pos = jnp.broadcast_to(idx_f[:, 0:1], (tr, w))
        for p in range(1, pack):
            pos = jnp.where(col >= p * d_model, idx_f[:, p : p + 1], pos)
    else:
        # Large pack (tiny d_model): one-hot expansion on the otherwise idle MXU.
        col = lax.broadcasted_iota(jnp.int32, (pack, w), 1)
        grp = lax.broadcasted_iota(jnp.int32, (pack, w), 0)
        onehot = jnp.logical_and(col >= grp * d_model,
                                 col < (grp + 1) * d_model).astype(jnp.float32)
        pos = jnp.dot(idx_f, onehot, preferred_element_type=jnp.float32)

    # Single sinusoid: cos(x) == sin(x + pi/2), encoded in the per-column phase.
    o_ref[...] = jnp.sin(pos * freq + phase)


def fixed_embedding(x: jnp.ndarray, d_model: int, *, tile_tokens: int = 4096) -> jnp.ndarray:
    """FixedEmbedding forward: integer indices (...) -> (..., d_model) float32."""
    assert d_model % 2 == 0, "FixedEmbedding expects an even d_model"
    orig_shape = x.shape
    n = int(x.size)

    lane_w = math.lcm(d_model, 128)       # lane-dense slab width (multiple of 128)
    pack = lane_w // d_model              # tokens packed per slab row

    # Rows padded only to a multiple of 8 (one sublane tile) -- NOT to a multiple
    # of the block row count, so the trailing slice is usually a no-op.
    n_rows = max(_cdiv(n, pack), 1)
    n_rows_8 = _round_up(n_rows, 8)
    n_pad = n_rows_8 * pack

    # Block rows: target ~tile_tokens tokens per step, cap the output block at
    # ~4 MiB per buffer (VMEM-friendly on v5e/v7x), keep a multiple of 8.
    tr = min(max(tile_tokens // pack, 8), (1 << 20) // lane_w)
    tr = max(8, (tr // 8) * 8)
    # Prefer >=2 grid steps so the "parallel" axis can shard across v7x's 2 TCs.
    if n_rows_8 >= 16:
        tr = min(tr, _round_up(_cdiv(n_rows_8, 2), 8))
    tr = min(tr, n_rows_8)
    grid = _cdiv(n_rows_8, tr)

    # Compact index transport: `pack` indices per slab row.
    idx = jnp.zeros((n_pad,), jnp.int32).at[:n].set(x.reshape(-1).astype(jnp.int32))
    idx = idx.reshape(n_rows_8, pack)

    # Per-column constants of the lane-dense slab: frequency and phase (tiny,
    # fetched once -- the index_map is constant).
    feat = jnp.arange(lane_w, dtype=jnp.int32) % d_model
    freq_row = _div_term(d_model)[feat // 2].astype(jnp.float32)
    phase_row = (feat % 2).astype(jnp.float32) * (math.pi / 2.0)
    fp = jnp.stack([freq_row, phase_row], axis=0)          # (2, lane_w)

    kernel = functools.partial(_fixed_embedding_kernel, d_model=d_model, pack=pack)

    out_slab = pl.pallas_call(
        kernel,
        out_shape=jax.ShapeDtypeStruct((n_rows_8, lane_w), jnp.float32),
        grid_spec=pltpu.PrefetchScalarGridSpec(
            num_scalar_prefetch=0,
            grid=(grid,),
            in_specs=[
                pl.BlockSpec((tr, pack), lambda i: (i, 0)),      # packed indices
                pl.BlockSpec((2, lane_w), lambda i: (0, 0)),     # [freq; phase] row pair
            ],
            out_specs=pl.BlockSpec((tr, lane_w), lambda i: (i, 0)),
        ),
        compiler_params=pltpu.CompilerParams(
            dimension_semantics=("parallel",),
        ),
    )(idx, fp)

    # The slab is a row-major view of (n_pad, d_model); the reshape is free and
    # the slice is skipped entirely when no padding was added.
    out = out_slab.reshape(n_pad, d_model)
    if n_pad != n:
        out = out[:n]
    return out.reshape(*orig_shape, d_model)


if __name__ == "__main__":
    key = jax.random.PRNGKey(0)
    k1, k2 = jax.random.split(key)
    c_in = 24
    B, L = 2, 8

    # Case 1: typical temporal-feature usage (d_model not a multiple of 128 -> pack=4,
    # select-chain expansion, ragged padding + slice path).
    d_model = 32
    x = jax.random.randint(k1, (B, L), 0, c_in, dtype=jnp.int32)
    y = fixed_embedding(x, d_model)
    jax.block_until_ready(y)
    w = _build_fixed_weight(c_in, d_model)
    y_ref = jnp.take(w, x.reshape(-1), axis=0).reshape(B, L, d_model)
    assert y.shape == (B, L, d_model)
    assert jnp.allclose(y, y_ref, atol=1e-4), "mismatch vs reference gather (d_model=32)"

    # Case 2: d_model a multiple of 128 (pack == 1, no padding / no slice, 2 grid steps).
    d_model2 = 128
    x2 = jax.random.randint(k2, (B, L), 0, c_in, dtype=jnp.int32)
    y2 = fixed_embedding(x2, d_model2)
    jax.block_until_ready(y2)
    w2 = _build_fixed_weight(c_in, d_model2)
    y2_ref = jnp.take(w2, x2.reshape(-1), axis=0).reshape(B, L, d_model2)
    assert y2.shape == (B, L, d_model2)
    assert jnp.allclose(y2, y2_ref, atol=1e-4), "mismatch vs reference gather (d_model=128)"

    print("KERNEL_OK")
</pallas_src>

<mosaic_0001>
module attributes {stable_mosaic.version = 11 : i64} {
  func.func @_fixed_embedding_kernel(%arg0: i32, %arg1: memref<8x4xi32, #tpu.memory_space<vmem>>, %arg2: memref<2x128xf32, #tpu.memory_space<vmem>>, %arg3: memref<8x128xf32, #tpu.memory_space<vmem>>) attributes {dimension_semantics = [#tpu.dimension_semantics<parallel>], iteration_bounds = array<i64: 1>, scalar_prefetch = 0 : i64, scratch_operands = 0 : i64, tpu.core_type = #tpu.core_type<tc>, window_params = [{transform_indices = @transform_0, window_bounds = array<i64: 8, 4>}, {pipeline_mode = #tpu.pipeline_mode<synchronous>, transform_indices = @transform_1, window_bounds = array<i64: 2, 128>}, {transform_indices = @transform_2, window_bounds = array<i64: 8, 128>}]} {
    %c0 = arith.constant 0 : index
    %c0_0 = arith.constant 0 : index
    %0 = vector.load %arg1[%c0, %c0_0] : memref<8x4xi32, #tpu.memory_space<vmem>>, vector<8x4xi32>
    %1 = arith.sitofp %0 : vector<8x4xi32> to vector<8x4xf32>
    %c0_1 = arith.constant 0 : index
    %c0_2 = arith.constant 0 : index
    %2 = vector.load %arg2[%c0_1, %c0_2] : memref<2x128xf32, #tpu.memory_space<vmem>>, vector<2x128xf32>
    %3 = vector.extract_strided_slice %2 {offsets = [0, 0], sizes = [1, 128], strides = [1, 1]} : vector<2x128xf32> to vector<1x128xf32>
    %4 = vector.extract_strided_slice %2 {offsets = [1, 0], sizes = [1, 128], strides = [1, 1]} : vector<2x128xf32> to vector<1x128xf32>
    %5 = tpu.iota {dimensions = array<i32: 1>} : vector<1x128xi32>
    %6 = vector.extract_strided_slice %1 {offsets = [0, 0], sizes = [8, 1], strides = [1, 1]} : vector<8x4xf32> to vector<8x1xf32>
    %7 = vector.shape_cast %6 : vector<8x1xf32> to vector<8x1xf32>
    %8 = vector.broadcast %7 : vector<8x1xf32> to vector<8x128xf32>
    %c32_i32 = arith.constant 32 : i32
    %9 = vector.broadcast %c32_i32 : i32 to vector<1x128xi32>
    %10 = arith.cmpi sge, %5, %9 : vector<1x128xi32>
    %11 = vector.extract_strided_slice %1 {offsets = [0, 1], sizes = [8, 1], strides = [1, 1]} : vector<8x4xf32> to vector<8x1xf32>
    %12 = vector.shape_cast %10 : vector<1x128xi1> to vector<1x128xi1>
    %13 = vector.broadcast %12 : vector<1x128xi1> to vector<8x128xi1>
    %14 = vector.shape_cast %11 : vector<8x1xf32> to vector<8x1xf32>
    %15 = vector.broadcast %14 : vector<8x1xf32> to vector<8x128xf32>
    %16 = arith.select %13, %15, %8 : vector<8x128xi1>, vector<8x128xf32>
    %c64_i32 = arith.constant 64 : i32
    %17 = vector.broadcast %c64_i32 : i32 to vector<1x128xi32>
    %18 = arith.cmpi sge, %5, %17 : vector<1x128xi32>
    %19 = vector.extract_strided_slice %1 {offsets = [0, 2], sizes = [8, 1], strides = [1, 1]} : vector<8x4xf32> to vector<8x1xf32>
    %20 = vector.shape_cast %18 : vector<1x128xi1> to vector<1x128xi1>
    %21 = vector.broadcast %20 : vector<1x128xi1> to vector<8x128xi1>
    %22 = vector.shape_cast %19 : vector<8x1xf32> to vector<8x1xf32>
    %23 = vector.broadcast %22 : vector<8x1xf32> to vector<8x128xf32>
    %24 = arith.select %21, %23, %16 : vector<8x128xi1>, vector<8x128xf32>
    %c96_i32 = arith.constant 96 : i32
    %25 = vector.broadcast %c96_i32 : i32 to vector<1x128xi32>
    %26 = arith.cmpi sge, %5, %25 : vector<1x128xi32>
    %27 = vector.extract_strided_slice %1 {offsets = [0, 3], sizes = [8, 1], strides = [1, 1]} : vector<8x4xf32> to vector<8x1xf32>
    %28 = vector.shape_cast %26 : vector<1x128xi1> to vector<1x128xi1>
    %29 = vector.broadcast %28 : vector<1x128xi1> to vector<8x128xi1>
    %30 = vector.shape_cast %27 : vector<8x1xf32> to vector<8x1xf32>
    %31 = vector.broadcast %30 : vector<8x1xf32> to vector<8x128xf32>
    %32 = arith.select %29, %31, %24 : vector<8x128xi1>, vector<8x128xf32>
    %33 = vector.broadcast %3 : vector<1x128xf32> to vector<8x128xf32>
    %34 = arith.mulf %32, %33 : vector<8x128xf32>
    %35 = vector.broadcast %4 : vector<1x128xf32> to vector<8x128xf32>
    %36 = arith.addf %34, %35 : vector<8x128xf32>
    %37 = math.sin %36 : vector<8x128xf32>
    %c0_3 = arith.constant 0 : index
    %c0_4 = arith.constant 0 : index
    %38 = vector.load %arg3[%c0_3, %c0_4] : memref<8x128xf32, #tpu.memory_space<vmem>>, vector<8x128xf32>
    tpu.vector_store %arg3[%c0_3, %c0_4], %37 {strides = array<i32>} : memref<8x128xf32, #tpu.memory_space<vmem>>, vector<8x128xf32>,
    return
  }
  func.func @transform_0(%arg0: i32) -> (i32, i32) {
    %c0_i32 = arith.constant 0 : i32
    %c0_i32_0 = arith.constant 0 : i32
    return %arg0, %c0_i32 : i32, i32
  }
  func.func @transform_1(%arg0: i32) -> (i32, i32) {
    %c0_i32 = arith.constant 0 : i32
    %c0_i32_0 = arith.constant 0 : i32
    %c0_i32_1 = arith.constant 0 : i32
    return %c0_i32, %c0_i32_0 : i32, i32
  }
  func.func @transform_2(%arg0: i32) -> (i32, i32) {
    %c0_i32 = arith.constant 0 : i32
    %c0_i32_0 = arith.constant 0 : i32
    return %arg0, %c0_i32 : i32, i32
  }
}

</mosaic_0001>

<bundles_post_ra>
// kernel: tpu_custom_call.1
= control target key start
LH: loop header
LB: loop body
LE: loop exit
PB: predicated region body
PF: predicated region fallthrough
CT: control target
= control target key end

     0   :  { %v267_v1 = vmov 0   ;;  %v268_v3 = vmov 2   ;;  %s361_s0 = inlined_call_operand.vmem [shape: s32[8,4], index: 0, kind: input, shape index: {}]   ;;  %s362_s1 = inlined_call_operand.vmem [shape: f32[2,128], index: 1, kind: input, shape index: {}]   ;;  %s363_s2 = inlined_call_operand.hbm [shape: f32[8,128], index: 2, kind: output, shape index: {}]  }
   0x1   :  { %v12_v0 = vld [vmem:[%s361_s0] sm:$0xff]  ;;  %236 = vset.pattern.permute.xlu0 %v267_v1  ;;  %238 = vset.pattern.permute.xlu1 %v268_v3 }
   0x2   :  { %v13_v2 = vcvt.s32.f32 %v12_v0 }
   0x3   :  { %7 = vsyncpa [#allocation3], 0  ;;  %v269_v4 = vmov 1   ;;  %v270_v5 = vmov 3   ;;  %v15_v6 = vlaneseq  ;;  %v14_v10 = vld [vmem:[%s362_s1] sm:$0x3] }
   0x4   :  { %19 = vperm.xlu0 %236, %v13_v2   ;;  %34 = vperm.xlu1 %238, %v13_v2   ;;  %v46_v12 = vperm.slane %v14_v10, 0  ;;  %v48_v15 = vperm.slane %v14_v10, 1  ;;  %v271_v31 = vmov 2102212464   ;;  %v272_v33 = vmov 920167782  }
   0x5   :  { %v16_v9 = vand.u32 127, %v15_v6  ;;  %v273_v36 = vmov 1326507024   ;;  %v274_v38 = vmov 683565275   ;;  %s277_s1 = smov [#allocation2]  }
   0x6   :  { %v275_v40 = vmov 2475754826   ;;  %v276_v43 = vmov 2131351028   ;;  %s211_s12 = sshll.u32 %s277_s1, 4  ;;  %s213_s15 = sshll.u32 %s363_s2, 4  ;;  %s212_s12 = int_to_ptr.vmem [resolvable:$true] %s211_s12  ;;  %s214_s15 = int_to_ptr.hbm [resolvable:$true] %s213_s15 }
   0x7   :  { %vm22_vm0 = vcmp.ge.s32.totalorder %v16_v9, 32  ;;  %vm30_vm1 = vcmp.ge.s32.totalorder %v16_v9, 64  ;;  %vm38_vm2 = vcmp.ge.s32.totalorder %v16_v9, 96 }
   0xc   :  { %237 = vset.pattern.permute.xlu0 %v269_v4  ;;  %239 = vset.pattern.permute.xlu1 %v270_v5 }
   0xd   :  { %26 = vperm.xlu0 %237, %v13_v2   ;;  %42 = vperm.xlu1 %239, %v13_v2  }
  0x15   :  { %240 = vset.pattern.permute.xlu0 %v270_v5 }
  0x76   :  { %v20_v7 = vpop.permute.xlu0 %19  ;;  %v35_v8 = vpop.permute.xlu1 %34 }
  0x7f   :  { %v27_v11 = vpop.permute.xlu0 %26  ;;  %v43_v13 = vpop.permute.xlu1 %42 }
  0x80   :  { %v29_v14 = vsel %vm22_vm0, %v27_v11, %v20_v7 }
  0x81   :  { %v37_v16 = vsel %vm30_vm1, %v35_v8, %v29_v14 }
  0x82   :  { %v45_v17 = vsel %vm38_vm2, %v43_v13, %v37_v16 }
  0x83   :  { %v47_v18 = vmul.f32 %v46_v12, %v45_v17 }
  0x85   :  { %v300_v19 = vadd.f32 %v48_v15, %v47_v18 }
  0x87   :  { %v53_v20 = vand.u32 2139095040, %v300_v19  ;;  %v50_v23 = vand.u32 2147483647, %v300_v19  ;;  %vm52_vm15 = vcmp.lt.s32.totalorder %v300_v19, 0 }
  0x89   :  { %v54_v21 = vshrl.u32 %v53_v20, 23  ;;  %v57_v25 = vand.u32 8388607, %v50_v23  ;;  %vm51_vm0 = vcmp.le.f32.partialorder %v50_v23, 0.7853982 }
  0x8b   :  { %v222_v22 = vadd.s32 4294967169, %v54_v21  ;;  %v58_v29 = vor.u32 8388608, %v57_v25 }
  0x8d   :  { %v60_v24 = vadd.s32 1, %v222_v22  ;;  %v315_v50 = vshll.u32 %v58_v29, 8 }
  0x8f   :  { %vm61_vm3 = vcmp.gt.s32.totalorder %v60_v24, 0  ;;  %v99_v60 = vand.u32 65535, %v315_v50  ;;  %v100_v62 = vshrl.u32 %v315_v50, 16 }
  0x90   :  { %v62_v26 = vsel %vm61_vm3, %v60_v24, 0 }
  0x91   :  { %v64_v27 = vand.u32 31, %v62_v26  ;;  %v308_v30 = vshrl.u32 %v62_v26, 5 }
  0x93   :  { %v306_v28 = vsub.s32 32, %v64_v27  ;;  %v76_v32 = vshll.u32 %v271_v31, %v64_v27  ;;  %v79_v34 = vshll.u32 %v272_v33, %v64_v27  ;;  %v67_v39 = vshll.u32 %v274_v38, %v64_v27 }
  0x94   :  { %v70_v42 = vshll.u32 %v275_v40, %v64_v27  ;;  %v73_v45 = vshll.u32 %v276_v43, %v64_v27  ;;  %vm85_vm4 = vcmp.lt.s32.totalorder %v308_v30, 4  ;;  %vm82_vm5 = vcmp.lt.s32.totalorder %v308_v30, 1 }
  0x95   :  { %v77_v35 = vshrl.u32 %v272_v33, %v306_v28  ;;  %v80_v37 = vshrl.u32 %v273_v36, %v306_v28  ;;  %v68_v41 = vshrl.u32 %v275_v40, %v306_v28  ;;  %v71_v44 = vshrl.u32 %v276_v43, %v306_v28 }
  0x96   :  { %v74_v46 = vshrl.u32 %v271_v31, %v306_v28  ;;  %vm84_vm6 = vcmp.lt.s32.totalorder %v308_v30, 3  ;;  %vm83_vm7 = vcmp.lt.s32.totalorder %v308_v30, 2  ;;  %v66_v24 = vshrl.u32 %v274_v38, %v306_v28 }
  0x97   :  { %v78_v47 = vor.u32 %v77_v35, %v76_v32  ;;  %v81_v48 = vor.u32 %v80_v37, %v79_v34  ;;  %v69_v49 = vor.u32 %v68_v41, %v67_v39  ;;  %v72_v51 = vor.u32 %v71_v44, %v70_v42 }
  0x98   :  { %v75_v52 = vor.u32 %v74_v46, %v73_v45 }
  0x99   :  { %v91_v53 = vsel %vm85_vm4, %v78_v47, 920167782  ;;  %v95_v54 = vsel %vm85_vm4, %v81_v48, 1326507024  ;;  %v90_v55 = vsel %vm82_vm5, %v69_v49, %v72_v51  ;;  %v86_v32 = vsel %vm82_vm5, %v66_v24, %v69_v49 }
  0x9a   :  { %v92_v56 = vsel %vm84_vm6, %v75_v52, %v91_v53  ;;  %v94_v57 = vsel %vm82_vm5, %v72_v51, %v75_v52  ;;  %v96_v59 = vsel %vm84_vm6, %v78_v47, %v95_v54  ;;  %v87_v20 = vsel %vm85_vm4, %v75_v52, 2102212464 }
  0x9b   :  { %v93_v58 = vsel %vm83_vm7, %v90_v55, %v92_v56  ;;  %v97_v61 = vsel %vm83_vm7, %v94_v57, %v96_v59  ;;  %v88_v33 = vsel %vm84_vm6, %v72_v51, %v87_v20  ;;  %vm193_vm4 = vweird.f32 %v300_v19 }
  0x9c   :  { %v123_v63 = vand.u32 65535, %v93_v58  ;;  %v124_v0 = vshrl.u32 %v93_v58, 16  ;;  %v101_v2 = vand.u32 65535, %v97_v61  ;;  %v102_v3 = vshrl.u32 %v97_v61, 16 }
  0x9d   :  { %v89_v38 = vsel %vm83_vm7, %v86_v32, %v88_v33 }
  0x9e   :  { %v126_v4 = vmul.u32 %v124_v0, %v99_v60  ;;  %v127_v5 = vmul.u32 %v123_v63, %v100_v62  ;;  %v104_v6 = vmul.u32 %v102_v3, %v99_v60  ;;  %v105_v7 = vmul.u32 %v101_v2, %v100_v62 }
  0x9f   :  { %v125_v8 = vmul.u32 %v123_v63, %v99_v60  ;;  %v103_v10 = vmul.u32 %v101_v2, %v99_v60  ;;  %v128_v12 = vmul.u32 %v124_v0, %v100_v62  ;;  %v106_v13 = vmul.u32 %v102_v3, %v100_v62 }
  0xa0   :  { %v129_v9 = vshll.u32 %v126_v4, 16  ;;  %v107_v11 = vshll.u32 %v104_v6, 16  ;;  %v131_v14 = vshll.u32 %v127_v5, 16  ;;  %v109_v16 = vshll.u32 %v105_v7, 16 }
  0xa1   :  { %v130_v29 = vshrl.u32 %v126_v4, 16  ;;  %v108_v34 = vshrl.u32 %v104_v6, 16  ;;  %v132_v36 = vshrl.u32 %v127_v5, 16  ;;  %v110_v39 = vshrl.u32 %v105_v7, 16 }
  0xa2   :  { %vm133_vm8 = vc.u32 %v125_v8, %v129_v9  ;;  %v135_v15 = vadd.s32 %v129_v9, %v125_v8  ;;  %vm111_vm9 = vc.u32 %v103_v10, %v107_v11  ;;  %v113_v17 = vadd.s32 %v107_v11, %v103_v10 }
  0xa3   :  { %v134_v18 = vsel %vm133_vm8, 1, %v267_v1  ;;  %v112_v21 = vsel %vm111_vm9, 1, %v267_v1  ;;  %v143_v43 = vmul.u32 %v315_v50, %v89_v38 }
  0xa4   :  { %v136_v22 = vadd.s32 %v134_v18, %v128_v12  ;;  %vm137_vm10 = vc.u32 %v135_v15, %v131_v14  ;;  %v114_v25 = vadd.s32 %v112_v21, %v106_v13  ;;  %vm115_vm11 = vc.u32 %v113_v17, %v109_v16 }
  0xa5   :  { %v138_v26 = vsel %vm137_vm10, 1, %v267_v1  ;;  %v116_v27 = vsel %vm115_vm11, 1, %v267_v1  ;;  %v139_v1 = vadd.s32 %v135_v15, %v131_v14 }
  0xa6   :  { %v140_v31 = vadd.s32 %v138_v26, %v136_v22  ;;  %v118_v35 = vadd.s32 %v116_v27, %v114_v25 }
  0xa8   :  { %v141_v37 = vadd.s32 %v140_v31, %v130_v29  ;;  %v119_v28 = vadd.s32 %v118_v35, %v108_v34 }
  0xaa   :  { %v142_v40 = vadd.s32 %v141_v37, %v132_v36  ;;  %v120_v41 = vadd.s32 %v119_v28, %v110_v39 }
  0xac   :  { %v146_v42 = vadd.s32 1, %v142_v40  ;;  %vm145_vm12 = vc.u32 %v120_v41, %v139_v1  ;;  %v144_v55 = vadd.s32 %v139_v1, %v120_v41 }
  0xae   :  { %v147_v44 = vsel %vm145_vm12, %v146_v42, %v142_v40 }
  0xaf   :  { %v148_v45 = vadd.s32 %v147_v44, %v143_v43 }
  0xb1   :  { %v149_v46 = vadd.s32 536870912, %v148_v45 }
  0xb3   :  { %v150_v47 = vshrl.u32 %v149_v46, 30 }
  0xb5   :  { %v151_v48 = vshll.u32 %v150_v47, 30  ;;  %v174_v5 = vsub.s32 4, %v150_v47 }
  0xb7   :  { %v152_v49 = vsub.s32 %v148_v45, %v151_v48  ;;  %v175_v10 = vsel %vm52_vm15, %v174_v5, %v150_v47 }
  0xb8   :  { %v177_v13 = vsel %vm51_vm0, 0, %v175_v10 }
  0xb9   :  { %vm153_vm13 = vcmp.lt.s32.totalorder %v152_v49, 0  ;;  %v154_v51 = vsub.s32 0, %v152_v49  ;;  %v194_v18 = vadd.s32 3, %v177_v13 }
  0xbb   :  { %v155_v52 = vsel %vm153_vm13, %v154_v51, %v152_v49  ;;  %v195_v24 = vand.u32 3, %v194_v18 }
  0xbc   :  { %v156_v53 = vclz %v155_v52 }
  0xbd   :  { %vm197_vm1 = vcmp.eq.s32.totalorder %v195_v24, 0  ;;  %vm200_vm2 = vcmp.eq.s32.totalorder %v195_v24, 2  ;;  %vm196_vm3 = vcmp.lt.s32.totalorder %v195_v24, 2 }
  0xbe   :  { %v223_v54 = vadd.s32 4294967294, %v156_v53 }
  0xc0   :  { %vm224_vm14 = vcmp.lt.s32.totalorder %v223_v54, 0 }
  0xc1   :  { %v159_v30 = vsel %vm224_vm14, 0, %v223_v54 }
  0xc2   :  { %v160_v56 = vsub.s32 32, %v159_v30  ;;  %v164_v57 = vsub.s32 4294967266, %v159_v30  ;;  %v161_v58 = vshll.u32 %v152_v49, %v159_v30 }
  0xc4   :  { %v162_v59 = vshrl.u32 %v144_v55, %v160_v56  ;;  %v165_v50 = vadd.s32 127, %v164_v57 }
  0xc6   :  { %v163_v60 = vor.u32 %v162_v59, %v161_v58  ;;  %v166_v61 = vshll.u32 %v165_v50, 23 }
  0xc8   :  { %v167_v62 = vor.u32 4788187, %v166_v61  ;;  %v170_v0 = vcvt.s32.f32 %v163_v60 }
  0xca   :  { %v168_v63 = vand.u32 2147483647, %v167_v62 }
  0xcc   :  { %v171_v2 = vmul.f32 %v170_v0, %v168_v63 }
  0xce   :  { %v172_v3 = vxor.u32 2147483648, %v171_v2 }
  0xd0   :  { %v173_v4 = vsel %vm52_vm15, %v172_v3, %v171_v2 }
  0xd1   :  { %v176_v6 = vsel %vm51_vm0, %v300_v19, %v173_v4 }
  0xd2   :  { %v178_v7 = vmul.f32 %v176_v6, %v176_v6 }
  0xd4   :  { %v179_v8 = vmul.f32 -0.001358992, %v178_v7  ;;  %v186_v9 = vmul.f32 -0.00019511016, %v178_v7 }
  0xd6   :  { %v180_v11 = vadd.f32 0.041655596, %v179_v8  ;;  %v187_v12 = vadd.f32 0.008332121, %v186_v9 }
  0xd8   :  { %v181_v14 = vmul.f32 %v180_v11, %v178_v7  ;;  %v188_v15 = vmul.f32 %v187_v12, %v178_v7 }
  0xda   :  { %v182_v16 = vadd.f32 -0.4999988, %v181_v14  ;;  %v189_v17 = vadd.f32 -0.16666654, %v188_v15 }
  0xdc   :  { %v183_v20 = vmul.f32 %v182_v16, %v178_v7  ;;  %v190_v21 = vmul.f32 %v189_v17, %v178_v7 }
  0xde   :  { %v184_v22 = vadd.f32 1.0, %v183_v20  ;;  %v191_v23 = vadd.f32 1.0, %v190_v21 }
  0xe0   :  { %v192_v25 = vmul.f32 %v191_v23, %v176_v6  ;;  %v201_v26 = vxor.u32 2147483648, %v184_v22 }
  0xe2   :  { %v198_v27 = vxor.u32 2147483648, %v192_v25  ;;  %v202_v31 = vsel %vm200_vm2, %v201_v26, %v192_v25 }
  0xe4   :  { %v199_v29 = vsel %vm197_vm1, %v184_v22, %v198_v27 }
  0xe5   :  { %v203_v32 = vsel %vm196_vm3, %v199_v29, %v202_v31 }
  0xe6   :  { %v204_v33 = vsel %vm193_vm4, nan, %v203_v32 }
  0xe7   :  { %205 = vst [vmem:[#allocation2] sm:$0xff] %v204_v33 }
  0xe8   :  { %216 = dma.vmem_to_hbm [thread:$0]  %s212_s12, 128, %s214_s15, [#allocation3]  }
  0xe9   :  { %265 = dma.done.wait [#allocation3], 128  }
  0xea   :  { %266 = vsyncadd [#allocation3], 4294967168 }
  0xeb   :  { %221 = vsyncpa [#allocation3], 1 }

</bundles_post_ra>
